<compile_context>
chip_gen: v7x
topology: tpu7x:2x2x1
jax: 0.10.0
libtpu: 0.0.40
codegen_flags: <defaults>
</compile_context>

<pallas_src>
import jax
import jax.numpy as jnp
from jax.experimental import pallas as pl
from jax.experimental.pallas import tpu as pltpu


# ---------------------------------------------------------------------------
# Fused kernel: the entire forward for one graph per grid step.
# ---------------------------------------------------------------------------
def _mixupnet_kernel(lam_ref, adj_ref, x_ref, invdeg_ref, mask_ref, perm_ref,
                     w1r_ref, w1s_ref, b1_ref,
                     whr_ref, whs_ref, bh_ref,
                     l1w_ref, l1b_ref, l2w_ref, l2b_ref,
                     out_ref, h_ref):
    mn = h_ref.shape[0]                    # padded nodes per graph
    n_hidden = whr_ref.shape[0]            # number of hidden GraphConv layers

    adj = adj_ref[0]                       # [mn, mn] bf16, 0/1 (A[dst, src] = 1)
    x0 = x_ref[0]                          # [mn, F] bf16
    inv_deg = invdeg_ref[0]                # [mn, 1] f32 (exact)

    # conv1 (aggr='sum') + relu.  (A @ x) first since F < H (cheaper N^2 term).
    agg = jnp.dot(adj, x0, preferred_element_type=jnp.float32)          # [mn, F]
    h = (jnp.dot(agg.astype(jnp.bfloat16), w1r_ref[...],
                 preferred_element_type=jnp.float32)
         + jnp.dot(x0, w1s_ref[...], preferred_element_type=jnp.float32)
         + b1_ref[...])                    # bias only on lin_rel (PyG GraphConv)
    h_ref[...] = jnp.maximum(h, 0.0)

    for l in range(n_hidden):
        # hidden conv (aggr='mean') + relu
        hb = h_ref[...].astype(jnp.bfloat16)
        agg = jnp.dot(adj, hb, preferred_element_type=jnp.float32) * inv_deg
        h = (jnp.dot(agg.astype(jnp.bfloat16), whr_ref[l],
                     preferred_element_type=jnp.float32)
             + jnp.dot(hb, whs_ref[l], preferred_element_type=jnp.float32)
             + bh_ref[l:l + 1, :])
        h_ref[...] = jnp.maximum(h, 0.0)

        # MixUp: out = lam*h + (1-lam)*h[perm]; identity (skipped) when lam == 1.
        @pl.when(lam_ref[0] != 1.0)
        def _(l=l):
            lam = lam_ref[0]
            pr = perm_ref[0, :, l:l + 1]                               # [mn, 1] i32
            col = jax.lax.broadcasted_iota(jnp.int32, (mn, mn), 1)
            pmat = jnp.where(pr == col, 1.0, 0.0)                      # one-hot gather
            hcur = h_ref[...]
            h_ref[...] = lam * hcur + (1.0 - lam) * jnp.dot(
                pmat, hcur, preferred_element_type=jnp.float32)

    # global_add_pool over this graph's valid rows (VPU row-sum, no matmul).
    pooled = jnp.sum(h_ref[...] * mask_ref[0], axis=0, keepdims=True)  # [1, H]

    # head: relu(lin1) -> dropout(training=False) is identity -> lin2 -> log_softmax
    z = jnp.dot(pooled.astype(jnp.bfloat16), l1w_ref[...],
                preferred_element_type=jnp.float32) + l1b_ref[...]
    z = jnp.maximum(z, 0.0)
    logits = jnp.dot(z.astype(jnp.bfloat16), l2w_ref[...],
                     preferred_element_type=jnp.float32) + l2b_ref[...]
    s = logits - jnp.max(logits, axis=-1, keepdims=True)
    out_ref[0] = s - jnp.log(jnp.sum(jnp.exp(s), axis=-1, keepdims=True))


def mixup_net_forward(lam, adj_blk, x_blk, inv_deg, mask, perm, params):
    g, mn, f = x_blk.shape
    h = params["w1_rel"].shape[1]
    c = params["lin2_w"].shape[1]
    n_hidden = params["wh_rel"].shape[0]

    const2 = lambda i: (0, 0)
    const3 = lambda i: (0, 0, 0)

    out = pl.pallas_call(
        _mixupnet_kernel,
        grid=(g,),
        in_specs=[
            pl.BlockSpec(memory_space=pltpu.MemorySpace.SMEM),       # lam (scalar)
            pl.BlockSpec((1, mn, mn), lambda i: (i, 0, 0)),          # adjacency block
            pl.BlockSpec((1, mn, f), lambda i: (i, 0, 0)),           # node features
            pl.BlockSpec((1, mn, 1), lambda i: (i, 0, 0)),           # 1/deg (f32)
            pl.BlockSpec((1, mn, 1), lambda i: (i, 0, 0)),           # valid-node mask
            pl.BlockSpec((1, mn, n_hidden), lambda i: (i, 0, 0)),    # mixup perms (i32)
            pl.BlockSpec((f, h), const2),                            # conv1 W_rel
            pl.BlockSpec((f, h), const2),                            # conv1 W_root
            pl.BlockSpec((1, h), const2),                            # conv1 b_rel
            pl.BlockSpec((n_hidden, h, h), const3),                  # hidden W_rel
            pl.BlockSpec((n_hidden, h, h), const3),                  # hidden W_root
            pl.BlockSpec((n_hidden, h), const2),                     # hidden b_rel
            pl.BlockSpec((h, h), const2),                            # lin1 W
            pl.BlockSpec((1, h), const2),                            # lin1 b
            pl.BlockSpec((h, c), const2),                            # lin2 W
            pl.BlockSpec((1, c), const2),                            # lin2 b
        ],
        out_specs=pl.BlockSpec((1, 1, c), lambda i: (i, 0, 0)),
        out_shape=jax.ShapeDtypeStruct((g, 1, c), jnp.float32),
        scratch_shapes=[pltpu.VMEM((mn, h), jnp.float32)],           # resident activations
        compiler_params=pltpu.CompilerParams(
            dimension_semantics=("parallel",)),
    )(lam, adj_blk, x_blk, inv_deg, mask, perm,
      params["w1_rel"], params["w1_root"], params["b1"],
      params["wh_rel"], params["wh_root"], params["bh"],
      params["lin1_w"], params["lin1_b"], params["lin2_w"], params["lin2_b"])
    return out.reshape(g, c)


# ---------------------------------------------------------------------------
# Parameters & pure-JAX reference (for correctness check)
# ---------------------------------------------------------------------------
def init_params(key, num_features, hidden, num_classes, num_layers):
    def dense(k, fan_in, fan_out):
        s = 1.0 / jnp.sqrt(jnp.float32(fan_in))
        return jax.random.uniform(k, (fan_in, fan_out), jnp.float32, -s, s)

    n_hidden = num_layers - 1
    keys = jax.random.split(key, 7 + 3 * n_hidden)
    it = iter(list(keys))
    p = {
        "w1_rel": dense(next(it), num_features, hidden),
        "w1_root": dense(next(it), num_features, hidden),
        "b1": jax.random.uniform(next(it), (hidden,), jnp.float32, -0.1, 0.1),
    }
    wh_rel, wh_root, bh = [], [], []
    for _ in range(n_hidden):
        wh_rel.append(dense(next(it), hidden, hidden))
        wh_root.append(dense(next(it), hidden, hidden))
        bh.append(jax.random.uniform(next(it), (hidden,), jnp.float32, -0.1, 0.1))
    p["wh_rel"] = jnp.stack(wh_rel)
    p["wh_root"] = jnp.stack(wh_root)
    p["bh"] = jnp.stack(bh)
    p["lin1_w"] = dense(next(it), hidden, hidden)
    p["lin1_b"] = jax.random.uniform(next(it), (hidden,), jnp.float32, -0.1, 0.1)
    p["lin2_w"] = dense(next(it), hidden, num_classes)
    p["lin2_b"] = jax.random.uniform(next(it), (num_classes,), jnp.float32, -0.1, 0.1)
    return p


def pack_params_for_kernel(p):
    # bf16 for MXU operands, f32 biases; biases reshaped to [1, H] / [1, C].
    return {
        "w1_rel": p["w1_rel"].astype(jnp.bfloat16),
        "w1_root": p["w1_root"].astype(jnp.bfloat16),
        "b1": p["b1"].reshape(1, -1),
        "wh_rel": p["wh_rel"].astype(jnp.bfloat16),
        "wh_root": p["wh_root"].astype(jnp.bfloat16),
        "bh": p["bh"],
        "lin1_w": p["lin1_w"].astype(jnp.bfloat16),
        "lin1_b": p["lin1_b"].reshape(1, -1),
        "lin2_w": p["lin2_w"].astype(jnp.bfloat16),
        "lin2_b": p["lin2_b"].reshape(1, -1),
    }


def reference_forward(x_blk, adj_blk, inv_deg, mask, perm, p, lam):
    # Pure-JAX f32 reference of MixUPNet.forward (eval dropout = identity).
    adj = adj_blk.astype(jnp.float32)
    x = x_blk.astype(jnp.float32)
    agg = jnp.einsum("gij,gjf->gif", adj, x)
    h = jax.nn.relu(jnp.einsum("gif,fh->gih", agg, p["w1_rel"])
                    + jnp.einsum("gif,fh->gih", x, p["w1_root"]) + p["b1"])
    n_hidden = p["wh_rel"].shape[0]
    for l in range(n_hidden):
        agg = jnp.einsum("gij,gjh->gih", adj, h) * inv_deg
        h = jax.nn.relu(jnp.einsum("gih,hk->gik", agg, p["wh_rel"][l])
                        + jnp.einsum("gih,hk->gik", h, p["wh_root"][l]) + p["bh"][l])
        hp = jax.vmap(lambda hb, pb: hb[pb])(h, perm[:, :, l])
        h = lam * h + (1.0 - lam) * hp
    pooled = jnp.sum(h * mask, axis=1)
    z = jax.nn.relu(pooled @ p["lin1_w"] + p["lin1_b"])
    logits = z @ p["lin2_w"] + p["lin2_b"]
    return jax.nn.log_softmax(logits, axis=-1)


# ---------------------------------------------------------------------------
if __name__ == "__main__":
    key = jax.random.PRNGKey(0)

    num_graphs = 2
    nodes_per_graph = 8          # all graphs padded to a common node count
    num_nodes = num_graphs * nodes_per_graph
    num_features = 8
    hidden = 32                  # NOTE: use a multiple of 128 for real workloads (lane-dense)
    num_classes = 4
    num_layers = 3
    n_hidden = num_layers - 1
    ptr = [nodes_per_graph * g for g in range(num_graphs + 1)]

    # node features
    key, kx = jax.random.split(key)
    x = jax.random.normal(kx, (num_nodes, num_features), jnp.float32)

    # deterministic edges: bidirectional ring inside each graph
    src, dst = [], []
    for g in range(num_graphs):
        lo, hi = ptr[g], ptr[g + 1]
        for i in range(lo, hi):
            j = lo + (i - lo + 1) % (hi - lo)
            src += [i, j]
            dst += [j, i]
    edge_index = jnp.asarray([src, dst], jnp.int32)

    # block-diagonal adjacency: only the per-graph diagonal blocks are kept.
    adj_full = jnp.zeros((num_nodes, num_nodes), jnp.float32).at[
        edge_index[1], edge_index[0]].add(1.0)
    adj_blk = jnp.stack([adj_full[ptr[g]:ptr[g + 1], ptr[g]:ptr[g + 1]]
                         for g in range(num_graphs)])                 # [G, mn, mn]
    deg = jnp.sum(adj_blk, axis=2, keepdims=True)
    inv_deg = 1.0 / jnp.where(deg > 0, deg, 1.0)                      # [G, mn, 1] f32
    mask = jnp.ones((num_graphs, nodes_per_graph, 1), jnp.float32)    # no padded rows here
    x_blk = x.reshape(num_graphs, nodes_per_graph, num_features)

    # per-(mixup layer, graph) within-graph permutations (MixUp's random_indices)
    perm = jnp.zeros((num_graphs, nodes_per_graph, n_hidden), jnp.int32)
    for l in range(n_hidden):
        for g in range(num_graphs):
            key, sub = jax.random.split(key)
            perm = perm.at[g, :, l].set(jax.random.permutation(sub, nodes_per_graph))

    key, kp = jax.random.split(key)
    params = init_params(kp, num_features, hidden, num_classes, num_layers)
    kparams = pack_params_for_kernel(params)

    fwd = jax.jit(mixup_net_forward)
    adj_bf16 = adj_blk.astype(jnp.bfloat16)
    x_bf16 = x_blk.astype(jnp.bfloat16)

    # eval path: lam == 1 -> in-kernel mixup branch is skipped at runtime (pl.when)
    out_eval = jax.block_until_ready(
        fwd(jnp.asarray([1.0], jnp.float32), adj_bf16, x_bf16, inv_deg, mask, perm, kparams))
    ref_eval = reference_forward(x_blk, adj_blk, inv_deg, mask, perm, params, 1.0)

    # mixup path exercised with lam != 1 (training-style mixup; dropout still off)
    # TODO(synk): training-mode dropout (p=0.5) via pltpu.prng_* not implemented.
    out_mix = jax.block_until_ready(
        fwd(jnp.asarray([0.5], jnp.float32), adj_bf16, x_bf16, inv_deg, mask, perm, kparams))
    ref_mix = reference_forward(x_blk, adj_blk, inv_deg, mask, perm, params, 0.5)

    for out, ref in ((out_eval, ref_eval), (out_mix, ref_mix)):
        assert out.shape == (num_graphs, num_classes)
        assert bool(jnp.all(jnp.isfinite(out)))
        assert bool(jnp.allclose(jnp.sum(jnp.exp(out), axis=-1), 1.0, atol=1e-5))
        # bf16 MXU inputs with f32 accumulation vs f32 reference
        assert bool(jnp.allclose(out, ref, atol=0.2, rtol=0.1)), (out, ref)
    print("KERNEL_OK")
</pallas_src>

<mosaic_0001>
module attributes {stable_mosaic.version = 11 : i64} {
  func.func @_mixupnet_kernel(%arg0: i32, %arg1: memref<1xf32, #tpu.memory_space<smem>>, %arg2: memref<1x8x8xbf16, #tpu.memory_space<vmem>>, %arg3: memref<1x8x8xbf16, #tpu.memory_space<vmem>>, %arg4: memref<1x8x1xf32, #tpu.memory_space<vmem>>, %arg5: memref<1x8x1xf32, #tpu.memory_space<vmem>>, %arg6: memref<1x8x2xi32, #tpu.memory_space<vmem>>, %arg7: memref<8x32xbf16, #tpu.memory_space<vmem>>, %arg8: memref<8x32xbf16, #tpu.memory_space<vmem>>, %arg9: memref<1x32xf32, #tpu.memory_space<vmem>>, %arg10: memref<2x32x32xbf16, #tpu.memory_space<vmem>>, %arg11: memref<2x32x32xbf16, #tpu.memory_space<vmem>>, %arg12: memref<2x32xf32, #tpu.memory_space<vmem>>, %arg13: memref<32x32xbf16, #tpu.memory_space<vmem>>, %arg14: memref<1x32xf32, #tpu.memory_space<vmem>>, %arg15: memref<32x4xbf16, #tpu.memory_space<vmem>>, %arg16: memref<1x4xf32, #tpu.memory_space<vmem>>, %arg17: memref<1x1x4xf32, #tpu.memory_space<vmem>>, %arg18: memref<8x32xf32, #tpu.memory_space<vmem>>) attributes {dimension_semantics = [#tpu.dimension_semantics<parallel>], iteration_bounds = array<i64: 2>, scalar_prefetch = 0 : i64, scratch_operands = 1 : i64, tpu.core_type = #tpu.core_type<tc>, window_params = [{transform_indices = @transform_0, window_bounds = array<i64: 1>}, {transform_indices = @transform_1, window_bounds = array<i64: 1, 8, 8>}, {transform_indices = @transform_2, window_bounds = array<i64: 1, 8, 8>}, {transform_indices = @transform_3, window_bounds = array<i64: 1, 8, 1>}, {transform_indices = @transform_4, window_bounds = array<i64: 1, 8, 1>}, {transform_indices = @transform_5, window_bounds = array<i64: 1, 8, 2>}, {pipeline_mode = #tpu.pipeline_mode<synchronous>, transform_indices = @transform_6, window_bounds = array<i64: 8, 32>}, {pipeline_mode = #tpu.pipeline_mode<synchronous>, transform_indices = @transform_7, window_bounds = array<i64: 8, 32>}, {pipeline_mode = #tpu.pipeline_mode<synchronous>, transform_indices = @transform_8, window_bounds = array<i64: 1, 32>}, {pipeline_mode = #tpu.pipeline_mode<synchronous>, transform_indices = @transform_9, window_bounds = array<i64: 2, 32, 32>}, {pipeline_mode = #tpu.pipeline_mode<synchronous>, transform_indices = @transform_10, window_bounds = array<i64: 2, 32, 32>}, {pipeline_mode = #tpu.pipeline_mode<synchronous>, transform_indices = @transform_11, window_bounds = array<i64: 2, 32>}, {pipeline_mode = #tpu.pipeline_mode<synchronous>, transform_indices = @transform_12, window_bounds = array<i64: 32, 32>}, {pipeline_mode = #tpu.pipeline_mode<synchronous>, transform_indices = @transform_13, window_bounds = array<i64: 1, 32>}, {pipeline_mode = #tpu.pipeline_mode<synchronous>, transform_indices = @transform_14, window_bounds = array<i64: 32, 4>}, {pipeline_mode = #tpu.pipeline_mode<synchronous>, transform_indices = @transform_15, window_bounds = array<i64: 1, 4>}, {transform_indices = @transform_16, window_bounds = array<i64: 1, 1, 4>}]} {
    %c0 = arith.constant 0 : index
    %c0_0 = arith.constant 0 : index
    %c0_1 = arith.constant 0 : index
    %0 = vector.load %arg2[%c0, %c0_0, %c0_1] : memref<1x8x8xbf16, #tpu.memory_space<vmem>>, vector<1x8x8xbf16>
    %1 = vector.shape_cast %0 : vector<1x8x8xbf16> to vector<8x8xbf16>
    %c0_2 = arith.constant 0 : index
    %c0_3 = arith.constant 0 : index
    %c0_4 = arith.constant 0 : index
    %2 = vector.load %arg3[%c0_2, %c0_3, %c0_4] : memref<1x8x8xbf16, #tpu.memory_space<vmem>>, vector<1x8x8xbf16>
    %3 = vector.shape_cast %2 : vector<1x8x8xbf16> to vector<8x8xbf16>
    %c0_5 = arith.constant 0 : index
    %c0_6 = arith.constant 0 : index
    %c0_7 = arith.constant 0 : index
    %4 = vector.load %arg4[%c0_5, %c0_6, %c0_7] : memref<1x8x1xf32, #tpu.memory_space<vmem>>, vector<1x8x1xf32>
    %5 = vector.shape_cast %4 : vector<1x8x1xf32> to vector<8x1xf32>
    %cst = arith.constant dense<0.000000e+00> : vector<8x8xf32>
    %6 = tpu.matmul %1, %3, %cst {dimension_numbers = #tpu.dot_dimension_numbers<[1], [0], [0], [1], [0, 0, 1, 1], [], []>} : vector<8x8xbf16>, vector<8x8xbf16>, vector<8x8xf32> -> vector<8x8xf32>
    %7 = arith.truncf %6 : vector<8x8xf32> to vector<8x8xbf16>
    %c0_8 = arith.constant 0 : index
    %c0_9 = arith.constant 0 : index
    %8 = vector.load %arg7[%c0_8, %c0_9] : memref<8x32xbf16, #tpu.memory_space<vmem>>, vector<8x32xbf16>
    %cst_10 = arith.constant dense<0.000000e+00> : vector<8x32xf32>
    %9 = tpu.matmul %7, %8, %cst_10 {dimension_numbers = #tpu.dot_dimension_numbers<[1], [0], [0], [1], [0, 0, 1, 1], [], []>} : vector<8x8xbf16>, vector<8x32xbf16>, vector<8x32xf32> -> vector<8x32xf32>
    %c0_11 = arith.constant 0 : index
    %c0_12 = arith.constant 0 : index
    %10 = vector.load %arg8[%c0_11, %c0_12] : memref<8x32xbf16, #tpu.memory_space<vmem>>, vector<8x32xbf16>
    %cst_13 = arith.constant dense<0.000000e+00> : vector<8x32xf32>
    %11 = tpu.matmul %3, %10, %cst_13 {dimension_numbers = #tpu.dot_dimension_numbers<[1], [0], [0], [1], [0, 0, 1, 1], [], []>} : vector<8x8xbf16>, vector<8x32xbf16>, vector<8x32xf32> -> vector<8x32xf32>
    %12 = arith.addf %9, %11 : vector<8x32xf32>
    %c0_14 = arith.constant 0 : index
    %c0_15 = arith.constant 0 : index
    %13 = vector.load %arg9[%c0_14, %c0_15] : memref<1x32xf32, #tpu.memory_space<vmem>>, vector<1x32xf32>
    %14 = vector.broadcast %13 : vector<1x32xf32> to vector<8x32xf32>
    %15 = arith.addf %12, %14 : vector<8x32xf32>
    %cst_16 = arith.constant 0.000000e+00 : f32
    %16 = vector.broadcast %cst_16 : f32 to vector<8x32xf32>
    %17 = arith.maximumf %15, %16 : vector<8x32xf32>
    %c0_17 = arith.constant 0 : index
    %c0_18 = arith.constant 0 : index
    %18 = vector.load %arg18[%c0_17, %c0_18] : memref<8x32xf32, #tpu.memory_space<vmem>>, vector<8x32xf32>
    tpu.vector_store %arg18[%c0_17, %c0_18], %17 {strides = array<i32>} : memref<8x32xf32, #tpu.memory_space<vmem>>, vector<8x32xf32>,
    %c0_19 = arith.constant 0 : index
    %c0_20 = arith.constant 0 : index
    %19 = vector.load %arg18[%c0_19, %c0_20] : memref<8x32xf32, #tpu.memory_space<vmem>>, vector<8x32xf32>
    %20 = arith.truncf %19 : vector<8x32xf32> to vector<8x32xbf16>
    %cst_21 = arith.constant dense<0.000000e+00> : vector<8x32xf32>
    %21 = tpu.matmul %1, %20, %cst_21 {dimension_numbers = #tpu.dot_dimension_numbers<[1], [0], [0], [1], [0, 0, 1, 1], [], []>} : vector<8x8xbf16>, vector<8x32xbf16>, vector<8x32xf32> -> vector<8x32xf32>
    %22 = vector.broadcast %5 : vector<8x1xf32> to vector<8x32xf32>
    %23 = arith.mulf %21, %22 : vector<8x32xf32>
    %24 = arith.truncf %23 : vector<8x32xf32> to vector<8x32xbf16>
    %c0_22 = arith.constant 0 : index
    %c0_23 = arith.constant 0 : index
    %c0_24 = arith.constant 0 : index
    %25 = vector.load %arg10[%c0_22, %c0_23, %c0_24] : memref<2x32x32xbf16, #tpu.memory_space<vmem>>, vector<1x32x32xbf16>
    %26 = vector.shape_cast %25 : vector<1x32x32xbf16> to vector<32x32xbf16>
    %cst_25 = arith.constant dense<0.000000e+00> : vector<8x32xf32>
    %27 = tpu.matmul %24, %26, %cst_25 {dimension_numbers = #tpu.dot_dimension_numbers<[1], [0], [0], [1], [0, 0, 1, 1], [], []>} : vector<8x32xbf16>, vector<32x32xbf16>, vector<8x32xf32> -> vector<8x32xf32>
    %c0_26 = arith.constant 0 : index
    %c0_27 = arith.constant 0 : index
    %c0_28 = arith.constant 0 : index
    %28 = vector.load %arg11[%c0_26, %c0_27, %c0_28] : memref<2x32x32xbf16, #tpu.memory_space<vmem>>, vector<1x32x32xbf16>
    %29 = vector.shape_cast %28 : vector<1x32x32xbf16> to vector<32x32xbf16>
    %cst_29 = arith.constant dense<0.000000e+00> : vector<8x32xf32>
    %30 = tpu.matmul %20, %29, %cst_29 {dimension_numbers = #tpu.dot_dimension_numbers<[1], [0], [0], [1], [0, 0, 1, 1], [], []>} : vector<8x32xbf16>, vector<32x32xbf16>, vector<8x32xf32> -> vector<8x32xf32>
    %31 = arith.addf %27, %30 : vector<8x32xf32>
    %c0_30 = arith.constant 0 : index
    %c0_31 = arith.constant 0 : index
    %32 = vector.load %arg12[%c0_30, %c0_31] : memref<2x32xf32, #tpu.memory_space<vmem>>, vector<1x32xf32>
    %33 = vector.broadcast %32 : vector<1x32xf32> to vector<8x32xf32>
    %34 = arith.addf %31, %33 : vector<8x32xf32>
    %cst_32 = arith.constant 0.000000e+00 : f32
    %35 = vector.broadcast %cst_32 : f32 to vector<8x32xf32>
    %36 = arith.maximumf %34, %35 : vector<8x32xf32>
    %c0_33 = arith.constant 0 : index
    %c0_34 = arith.constant 0 : index
    %37 = vector.load %arg18[%c0_33, %c0_34] : memref<8x32xf32, #tpu.memory_space<vmem>>, vector<8x32xf32>
    tpu.vector_store %arg18[%c0_33, %c0_34], %36 {strides = array<i32>} : memref<8x32xf32, #tpu.memory_space<vmem>>, vector<8x32xf32>,
    %c0_35 = arith.constant 0 : index
    %38 = memref.load %arg1[%c0_35] : memref<1xf32, #tpu.memory_space<smem>>
    %cst_36 = arith.constant 1.000000e+00 : f32
    %39 = arith.cmpf one, %38, %cst_36 : f32
    %40 = arith.extui %39 : i1 to i32
    %c0_i32 = arith.constant 0 : i32
    %41 = arith.cmpi ne, %40, %c0_i32 : i32
    scf.if %41 {
      %c0_77 = arith.constant 0 : index
      %97 = memref.load %arg1[%c0_77] : memref<1xf32, #tpu.memory_space<smem>>
      %c0_78 = arith.constant 0 : index
      %c0_79 = arith.constant 0 : index
      %c0_80 = arith.constant 0 : index
      %98 = vector.load %arg6[%c0_78, %c0_79, %c0_80] : memref<1x8x2xi32, #tpu.memory_space<vmem>>, vector<1x8x1xi32>
      %99 = vector.shape_cast %98 : vector<1x8x1xi32> to vector<8x1xi32>
      %100 = tpu.iota {dimensions = array<i32: 1>} : vector<8x8xi32>
      %101 = vector.broadcast %99 : vector<8x1xi32> to vector<8x8xi32>
      %102 = arith.cmpi eq, %101, %100 : vector<8x8xi32>
      %cst_81 = arith.constant 1.000000e+00 : f32
      %cst_82 = arith.constant 0.000000e+00 : f32
      %103 = vector.broadcast %cst_81 : f32 to vector<8x8xf32>
      %104 = vector.broadcast %cst_82 : f32 to vector<8x8xf32>
      %105 = arith.select %102, %103, %104 : vector<8x8xi1>, vector<8x8xf32>
      %c0_83 = arith.constant 0 : index
      %c0_84 = arith.constant 0 : index
      %106 = vector.load %arg18[%c0_83, %c0_84] : memref<8x32xf32, #tpu.memory_space<vmem>>, vector<8x32xf32>
      %107 = vector.broadcast %97 : f32 to vector<8x32xf32>
      %108 = arith.mulf %107, %106 : vector<8x32xf32>
      %cst_85 = arith.constant 1.000000e+00 : f32
      %109 = arith.subf %cst_85, %97 : f32
      %cst_86 = arith.constant dense<0.000000e+00> : vector<8x32xf32>
      %110 = tpu.matmul %105, %106, %cst_86 {dimension_numbers = #tpu.dot_dimension_numbers<[1], [0], [0], [1], [0, 0, 1, 1], [], []>} : vector<8x8xf32>, vector<8x32xf32>, vector<8x32xf32> -> vector<8x32xf32>
      %111 = vector.broadcast %109 : f32 to vector<8x32xf32>
      %112 = arith.mulf %111, %110 : vector<8x32xf32>
      %113 = arith.addf %108, %112 : vector<8x32xf32>
      %c0_87 = arith.constant 0 : index
      %c0_88 = arith.constant 0 : index
      %114 = vector.load %arg18[%c0_87, %c0_88] : memref<8x32xf32, #tpu.memory_space<vmem>>, vector<8x32xf32>
      tpu.vector_store %arg18[%c0_87, %c0_88], %113 {strides = array<i32>} : memref<8x32xf32, #tpu.memory_space<vmem>>, vector<8x32xf32>,
    } else {
    }
    %c0_37 = arith.constant 0 : index
    %c0_38 = arith.constant 0 : index
    %42 = vector.load %arg18[%c0_37, %c0_38] : memref<8x32xf32, #tpu.memory_space<vmem>>, vector<8x32xf32>
    %43 = arith.truncf %42 : vector<8x32xf32> to vector<8x32xbf16>
    %cst_39 = arith.constant dense<0.000000e+00> : vector<8x32xf32>
    %44 = tpu.matmul %1, %43, %cst_39 {dimension_numbers = #tpu.dot_dimension_numbers<[1], [0], [0], [1], [0, 0, 1, 1], [], []>} : vector<8x8xbf16>, vector<8x32xbf16>, vector<8x32xf32> -> vector<8x32xf32>
    %45 = vector.broadcast %5 : vector<8x1xf32> to vector<8x32xf32>
    %46 = arith.mulf %44, %45 : vector<8x32xf32>
    %47 = arith.truncf %46 : vector<8x32xf32> to vector<8x32xbf16>
    %c1 = arith.constant 1 : index
    %c0_40 = arith.constant 0 : index
    %c0_41 = arith.constant 0 : index
    %48 = vector.load %arg10[%c1, %c0_40, %c0_41] : memref<2x32x32xbf16, #tpu.memory_space<vmem>>, vector<1x32x32xbf16>
    %49 = vector.shape_cast %48 : vector<1x32x32xbf16> to vector<32x32xbf16>
    %cst_42 = arith.constant dense<0.000000e+00> : vector<8x32xf32>
    %50 = tpu.matmul %47, %49, %cst_42 {dimension_numbers = #tpu.dot_dimension_numbers<[1], [0], [0], [1], [0, 0, 1, 1], [], []>} : vector<8x32xbf16>, vector<32x32xbf16>, vector<8x32xf32> -> vector<8x32xf32>
    %c1_43 = arith.constant 1 : index
    %c0_44 = arith.constant 0 : index
    %c0_45 = arith.constant 0 : index
    %51 = vector.load %arg11[%c1_43, %c0_44, %c0_45] : memref<2x32x32xbf16, #tpu.memory_space<vmem>>, vector<1x32x32xbf16>
    %52 = vector.shape_cast %51 : vector<1x32x32xbf16> to vector<32x32xbf16>
    %cst_46 = arith.constant dense<0.000000e+00> : vector<8x32xf32>
    %53 = tpu.matmul %43, %52, %cst_46 {dimension_numbers = #tpu.dot_dimension_numbers<[1], [0], [0], [1], [0, 0, 1, 1], [], []>} : vector<8x32xbf16>, vector<32x32xbf16>, vector<8x32xf32> -> vector<8x32xf32>
    %54 = arith.addf %50, %53 : vector<8x32xf32>
    %c1_47 = arith.constant 1 : index
    %c0_48 = arith.constant 0 : index
    %55 = vector.load %arg12[%c1_47, %c0_48] : memref<2x32xf32, #tpu.memory_space<vmem>>, vector<1x32xf32>
    %56 = vector.broadcast %55 : vector<1x32xf32> to vector<8x32xf32>
    %57 = arith.addf %54, %56 : vector<8x32xf32>
    %cst_49 = arith.constant 0.000000e+00 : f32
    %58 = vector.broadcast %cst_49 : f32 to vector<8x32xf32>
    %59 = arith.maximumf %57, %58 : vector<8x32xf32>
    %c0_50 = arith.constant 0 : index
    %c0_51 = arith.constant 0 : index
    %60 = vector.load %arg18[%c0_50, %c0_51] : memref<8x32xf32, #tpu.memory_space<vmem>>, vector<8x32xf32>
    tpu.vector_store %arg18[%c0_50, %c0_51], %59 {strides = array<i32>} : memref<8x32xf32, #tpu.memory_space<vmem>>, vector<8x32xf32>,
    %c0_52 = arith.constant 0 : index
    %61 = memref.load %arg1[%c0_52] : memref<1xf32, #tpu.memory_space<smem>>
    %cst_53 = arith.constant 1.000000e+00 : f32
    %62 = arith.cmpf one, %61, %cst_53 : f32
    %63 = arith.extui %62 : i1 to i32
    %c0_i32_54 = arith.constant 0 : i32
    %64 = arith.cmpi ne, %63, %c0_i32_54 : i32
    scf.if %64 {
      %c0_77 = arith.constant 0 : index
      %97 = memref.load %arg1[%c0_77] : memref<1xf32, #tpu.memory_space<smem>>
      %c0_78 = arith.constant 0 : index
      %c0_79 = arith.constant 0 : index
      %c1_80 = arith.constant 1 : index
      %98 = vector.load %arg6[%c0_78, %c0_79, %c1_80] : memref<1x8x2xi32, #tpu.memory_space<vmem>>, vector<1x8x1xi32>
      %99 = vector.shape_cast %98 : vector<1x8x1xi32> to vector<8x1xi32>
      %100 = tpu.iota {dimensions = array<i32: 1>} : vector<8x8xi32>
      %101 = vector.broadcast %99 : vector<8x1xi32> to vector<8x8xi32>
      %102 = arith.cmpi eq, %101, %100 : vector<8x8xi32>
      %cst_81 = arith.constant 1.000000e+00 : f32
      %cst_82 = arith.constant 0.000000e+00 : f32
      %103 = vector.broadcast %cst_81 : f32 to vector<8x8xf32>
      %104 = vector.broadcast %cst_82 : f32 to vector<8x8xf32>
      %105 = arith.select %102, %103, %104 : vector<8x8xi1>, vector<8x8xf32>
      %c0_83 = arith.constant 0 : index
      %c0_84 = arith.constant 0 : index
      %106 = vector.load %arg18[%c0_83, %c0_84] : memref<8x32xf32, #tpu.memory_space<vmem>>, vector<8x32xf32>
      %107 = vector.broadcast %97 : f32 to vector<8x32xf32>
      %108 = arith.mulf %107, %106 : vector<8x32xf32>
      %cst_85 = arith.constant 1.000000e+00 : f32
      %109 = arith.subf %cst_85, %97 : f32
      %cst_86 = arith.constant dense<0.000000e+00> : vector<8x32xf32>
      %110 = tpu.matmul %105, %106, %cst_86 {dimension_numbers = #tpu.dot_dimension_numbers<[1], [0], [0], [1], [0, 0, 1, 1], [], []>} : vector<8x8xf32>, vector<8x32xf32>, vector<8x32xf32> -> vector<8x32xf32>
      %111 = vector.broadcast %109 : f32 to vector<8x32xf32>
      %112 = arith.mulf %111, %110 : vector<8x32xf32>
      %113 = arith.addf %108, %112 : vector<8x32xf32>
      %c0_87 = arith.constant 0 : index
      %c0_88 = arith.constant 0 : index
      %114 = vector.load %arg18[%c0_87, %c0_88] : memref<8x32xf32, #tpu.memory_space<vmem>>, vector<8x32xf32>
      tpu.vector_store %arg18[%c0_87, %c0_88], %113 {strides = array<i32>} : memref<8x32xf32, #tpu.memory_space<vmem>>, vector<8x32xf32>,
    } else {
    }
    %c0_55 = arith.constant 0 : index
    %c0_56 = arith.constant 0 : index
    %65 = vector.load %arg18[%c0_55, %c0_56] : memref<8x32xf32, #tpu.memory_space<vmem>>, vector<8x32xf32>
    %c0_57 = arith.constant 0 : index
    %c0_58 = arith.constant 0 : index
    %c0_59 = arith.constant 0 : index
    %66 = vector.load %arg5[%c0_57, %c0_58, %c0_59] : memref<1x8x1xf32, #tpu.memory_space<vmem>>, vector<1x8x1xf32>
    %67 = vector.shape_cast %66 : vector<1x8x1xf32> to vector<8x1xf32>
    %68 = vector.broadcast %67 : vector<8x1xf32> to vector<8x32xf32>
    %69 = arith.mulf %65, %68 : vector<8x32xf32>
    %cst_60 = arith.constant dense<0.000000e+00> : vector<32xf32>
    %70 = vector.multi_reduction <add>, %69, %cst_60 [0] : vector<8x32xf32> to vector<32xf32>
    %71 = vector.shape_cast %70 : vector<32xf32> to vector<1x32xf32>
    %72 = arith.truncf %71 : vector<1x32xf32> to vector<1x32xbf16>
    %c0_61 = arith.constant 0 : index
    %c0_62 = arith.constant 0 : index
    %73 = vector.load %arg13[%c0_61, %c0_62] : memref<32x32xbf16, #tpu.memory_space<vmem>>, vector<32x32xbf16>
    %cst_63 = arith.constant dense<0.000000e+00> : vector<1x32xf32>
    %74 = tpu.matmul %72, %73, %cst_63 {dimension_numbers = #tpu.dot_dimension_numbers<[1], [0], [0], [1], [0, 0, 1, 1], [], []>} : vector<1x32xbf16>, vector<32x32xbf16>, vector<1x32xf32> -> vector<1x32xf32>
    %c0_64 = arith.constant 0 : index
    %c0_65 = arith.constant 0 : index
    %75 = vector.load %arg14[%c0_64, %c0_65] : memref<1x32xf32, #tpu.memory_space<vmem>>, vector<1x32xf32>
    %76 = arith.addf %74, %75 : vector<1x32xf32>
    %cst_66 = arith.constant 0.000000e+00 : f32
    %77 = vector.broadcast %cst_66 : f32 to vector<1x32xf32>
    %78 = arith.maximumf %76, %77 : vector<1x32xf32>
    %79 = arith.truncf %78 : vector<1x32xf32> to vector<1x32xbf16>
    %c0_67 = arith.constant 0 : index
    %c0_68 = arith.constant 0 : index
    %80 = vector.load %arg15[%c0_67, %c0_68] : memref<32x4xbf16, #tpu.memory_space<vmem>>, vector<32x4xbf16>
    %cst_69 = arith.constant dense<0.000000e+00> : vector<1x4xf32>
    %81 = tpu.matmul %79, %80, %cst_69 {dimension_numbers = #tpu.dot_dimension_numbers<[1], [0], [0], [1], [0, 0, 1, 1], [], []>} : vector<1x32xbf16>, vector<32x4xbf16>, vector<1x4xf32> -> vector<1x4xf32>
    %c0_70 = arith.constant 0 : index
    %c0_71 = arith.constant 0 : index
    %82 = vector.load %arg16[%c0_70, %c0_71] : memref<1x4xf32, #tpu.memory_space<vmem>>, vector<1x4xf32>
    %83 = arith.addf %81, %82 : vector<1x4xf32>
    %cst_72 = arith.constant dense<0xFF800000> : vector<1xf32>
    %84 = vector.multi_reduction <maximumf>, %83, %cst_72 [1] : vector<1x4xf32> to vector<1xf32>
    %85 = vector.shape_cast %84 : vector<1xf32> to vector<1x1xf32>
    %86 = vector.broadcast %85 : vector<1x1xf32> to vector<1x4xf32>
    %87 = arith.subf %83, %86 : vector<1x4xf32>
    %88 = math.exp %87 : vector<1x4xf32>
    %cst_73 = arith.constant dense<0.000000e+00> : vector<1xf32>
    %89 = vector.multi_reduction <add>, %88, %cst_73 [1] : vector<1x4xf32> to vector<1xf32>
    %90 = vector.shape_cast %89 : vector<1xf32> to vector<1x1xf32>
    %91 = math.log %90 : vector<1x1xf32>
    %92 = vector.broadcast %91 : vector<1x1xf32> to vector<1x4xf32>
    %93 = arith.subf %87, %92 : vector<1x4xf32>
    %c0_74 = arith.constant 0 : index
    %c0_75 = arith.constant 0 : index
    %c0_76 = arith.constant 0 : index
    %94 = vector.load %arg17[%c0_74, %c0_75, %c0_76] : memref<1x1x4xf32, #tpu.memory_space<vmem>>, vector<1x1x4xf32>
    %95 = vector.shape_cast %94 : vector<1x1x4xf32> to vector<1x4xf32>
    %96 = vector.shape_cast %93 : vector<1x4xf32> to vector<1x1x4xf32>
    tpu.vector_store %arg17[%c0_74, %c0_75, %c0_76], %96 {strides = array<i32>} : memref<1x1x4xf32, #tpu.memory_space<vmem>>, vector<1x1x4xf32>,
    return
  }
  func.func @transform_0(%arg0: i32) -> i32 {
    %c0_i32 = arith.constant 0 : i32
    %c0_i32_0 = arith.constant 0 : i32
    return %c0_i32 : i32
  }
  func.func @transform_1(%arg0: i32) -> (i32, i32, i32) {
    %c0_i32 = arith.constant 0 : i32
    %c0_i32_0 = arith.constant 0 : i32
    %c0_i32_1 = arith.constant 0 : i32
    return %arg0, %c0_i32, %c0_i32_0 : i32, i32, i32
  }
  func.func @transform_2(%arg0: i32) -> (i32, i32, i32) {
    %c0_i32 = arith.constant 0 : i32
    %c0_i32_0 = arith.constant 0 : i32
    %c0_i32_1 = arith.constant 0 : i32
    return %arg0, %c0_i32, %c0_i32_0 : i32, i32, i32
  }
  func.func @transform_3(%arg0: i32) -> (i32, i32, i32) {
    %c0_i32 = arith.constant 0 : i32
    %c0_i32_0 = arith.constant 0 : i32
    %c0_i32_1 = arith.constant 0 : i32
    return %arg0, %c0_i32, %c0_i32_0 : i32, i32, i32
  }
  func.func @transform_4(%arg0: i32) -> (i32, i32, i32) {
    %c0_i32 = arith.constant 0 : i32
    %c0_i32_0 = arith.constant 0 : i32
    %c0_i32_1 = arith.constant 0 : i32
    return %arg0, %c0_i32, %c0_i32_0 : i32, i32, i32
  }
  func.func @transform_5(%arg0: i32) -> (i32, i32, i32) {
    %c0_i32 = arith.constant 0 : i32
    %c0_i32_0 = arith.constant 0 : i32
    %c0_i32_1 = arith.constant 0 : i32
    return %arg0, %c0_i32, %c0_i32_0 : i32, i32, i32
  }
  func.func @transform_6(%arg0: i32) -> (i32, i32) {
    %c0_i32 = arith.constant 0 : i32
    %c0_i32_0 = arith.constant 0 : i32
    %c0_i32_1 = arith.constant 0 : i32
    return %c0_i32, %c0_i32_0 : i32, i32
  }
  func.func @transform_7(%arg0: i32) -> (i32, i32) {
    %c0_i32 = arith.constant 0 : i32
    %c0_i32_0 = arith.constant 0 : i32
    %c0_i32_1 = arith.constant 0 : i32
    return %c0_i32, %c0_i32_0 : i32, i32
  }
  func.func @transform_8(%arg0: i32) -> (i32, i32) {
    %c0_i32 = arith.constant 0 : i32
    %c0_i32_0 = arith.constant 0 : i32
    %c0_i32_1 = arith.constant 0 : i32
    return %c0_i32, %c0_i32_0 : i32, i32
  }
  func.func @transform_9(%arg0: i32) -> (i32, i32, i32) {
    %c0_i32 = arith.constant 0 : i32
    %c0_i32_0 = arith.constant 0 : i32
    %c0_i32_1 = arith.constant 0 : i32
    %c0_i32_2 = arith.constant 0 : i32
    return %c0_i32, %c0_i32_0, %c0_i32_1 : i32, i32, i32
  }
  func.func @transform_10(%arg0: i32) -> (i32, i32, i32) {
    %c0_i32 = arith.constant 0 : i32
    %c0_i32_0 = arith.constant 0 : i32
    %c0_i32_1 = arith.constant 0 : i32
    %c0_i32_2 = arith.constant 0 : i32
    return %c0_i32, %c0_i32_0, %c0_i32_1 : i32, i32, i32
  }
  func.func @transform_11(%arg0: i32) -> (i32, i32) {
    %c0_i32 = arith.constant 0 : i32
    %c0_i32_0 = arith.constant 0 : i32
    %c0_i32_1 = arith.constant 0 : i32
    return %c0_i32, %c0_i32_0 : i32, i32
  }
  func.func @transform_12(%arg0: i32) -> (i32, i32) {
    %c0_i32 = arith.constant 0 : i32
    %c0_i32_0 = arith.constant 0 : i32
    %c0_i32_1 = arith.constant 0 : i32
    return %c0_i32, %c0_i32_0 : i32, i32
  }
  func.func @transform_13(%arg0: i32) -> (i32, i32) {
    %c0_i32 = arith.constant 0 : i32
    %c0_i32_0 = arith.constant 0 : i32
    %c0_i32_1 = arith.constant 0 : i32
    return %c0_i32, %c0_i32_0 : i32, i32
  }
  func.func @transform_14(%arg0: i32) -> (i32, i32) {
    %c0_i32 = arith.constant 0 : i32
    %c0_i32_0 = arith.constant 0 : i32
    %c0_i32_1 = arith.constant 0 : i32
    return %c0_i32, %c0_i32_0 : i32, i32
  }
  func.func @transform_15(%arg0: i32) -> (i32, i32) {
    %c0_i32 = arith.constant 0 : i32
    %c0_i32_0 = arith.constant 0 : i32
    %c0_i32_1 = arith.constant 0 : i32
    return %c0_i32, %c0_i32_0 : i32, i32
  }
  func.func @transform_16(%arg0: i32) -> (i32, i32, i32) {
    %c0_i32 = arith.constant 0 : i32
    %c0_i32_0 = arith.constant 0 : i32
    %c0_i32_1 = arith.constant 0 : i32
    return %arg0, %c0_i32, %c0_i32_0 : i32, i32, i32
  }
}

</mosaic_0001>

<bundles_post_ra>
// kernel: mixup_net_forward.1
= control target key start
LH: loop header
LB: loop body
LE: loop exit
PB: predicated region body
PF: predicated region fallthrough
CT: control target
= control target key end

     0   :  { %s2565_s0 = inlined_call_operand.<no memory space> [shape: f32[1], index: 0, kind: input, shape index: {}]   ;;  %s2566_s1 = inlined_call_operand.hbm [shape: bf16[2,8,8], index: 1, kind: input, shape index: {}]   ;;  %s2567_s2 = inlined_call_operand.hbm [shape: bf16[2,8,8], index: 2, kind: input, shape index: {}]   ;;  %s2568_s3 = inlined_call_operand.vmem [shape: f32[2,8,1], index: 3, kind: input, shape index: {}]   ;;  %s2569_s4 = inlined_call_operand.vmem [shape: f32[2,8,1], index: 4, kind: input, shape index: {}]   ;;  %s2570_s5 = inlined_call_operand.vmem [shape: s32[2,8,2], index: 5, kind: input, shape index: {}]   ;;  %s2571_s6 = inlined_call_operand.vmem [shape: bf16[8,32], index: 6, kind: input, shape index: {}]   ;;  %s2572_s7 = inlined_call_operand.vmem [shape: bf16[8,32], index: 7, kind: input, shape index: {}]   ;;  %s2573_s8 = inlined_call_operand.hbm [shape: f32[1,32], index: 8, kind: input, shape index: {}]   ;;  %s2574_s9 = inlined_call_operand.vmem [shape: bf16[2,32,32], index: 9, kind: input, shape index: {}]   ;;  %s2575_s10 = inlined_call_operand.vmem [shape: bf16[2,32,32], index: 10, kind: input, shape index: {}]   ;;  %s2576_s11 = inlined_call_operand.vmem [shape: f32[2,32], index: 11, kind: input, shape index: {}]   ;;  %s2577_s12 = inlined_call_operand.vmem [shape: bf16[32,32], index: 12, kind: input, shape index: {}]   ;;  %s2578_s13 = inlined_call_operand.vmem [shape: f32[1,32], index: 13, kind: input, shape index: {}]   ;;  %s2579_s14 = inlined_call_operand.vmem [shape: bf16[32,4], index: 14, kind: input, shape index: {}]   ;;  %s2580_s15 = inlined_call_operand.vmem [shape: f32[1,4], index: 15, kind: input, shape index: {}]   ;;  %s2581_s16 = inlined_call_operand.hbm [shape: f32[2,1,4], index: 16, kind: output, shape index: {}]  }
   0x1   :  { %2596 = sst [smem:[#allocation21_spill]] %s2565_s0 }
   0x2   :  { %2597 = sst [smem:[#allocation22_spill]] %s2573_s8  ;;  %s2603_s23 = sld [smem:[#allocation21_spill]] }
   0x3   :  { %2598 = sst [smem:[#allocation23_spill]] %s2577_s12 }
   0x4   :  { %2599 = sst [smem:[#allocation24_spill]] %s2578_s13 }
   0x5   :  { %2600 = sst [smem:[#allocation25_spill]] %s2579_s14 }
   0x6   :  { %2601 = sst [smem:[#allocation26_spill]] %s2580_s15 }
   0x7   :  { %2602 = sst [smem:[#allocation27_spill]] %s2581_s16 }
   0x8   :  { %21 = sst [smem:[#allocation3]] %s2603_s23 }
   0x9   :  { %22 = vsyncpa [#allocation5], 0 }
   0xa   :  { %24 = vsyncpa [#allocation5 + $0x1], 0 }
   0xb   :  { %25 = vsyncpa [#allocation8], 0 }
   0xc   :  { %27 = vsyncpa [#allocation8 + $0x1], 0 }
   0xd   :  { %28 = vsyncpa [#allocation6], 0 }
   0xe   :  { %30 = vsyncpa [#allocation6 + $0x1], 0  ;;  %s2164_s24 = smov 0   ;;  %s2166_s25 = smov 0  }
   0xf   :  { %s2168_s26 = smov 0   ;;  %s2170_s27 = smov 0  }
  0x10 LB: > { %2604 = sst [smem:[#allocation15_spill]] %s2049_s24  ;;  %s2185_s28 = sadd.s32 4294967295, %s2061_s27   ;;  %s2061_s27 = sphi %s2170_s27, %s2638_s27   ;;  %s2057_s26 = sphi %s2168_s26, %s2640_s26   ;;  %s2053_s25 = sphi %s2166_s25, %s2642_s25   ;;  %s2049_s24 = sphi %s2164_s24, %s2641_s24  }
  0x11   : > { %2605 = sst [smem:[#allocation16_spill]] %s2057_s26  ;;  %s1634_s29 = sadd.s32 4294967294, %s2061_s27  }
  0x12   : > { %p77_p0 = scmp.ne.s32.totalorder %s2053_s25, %s2049_s24  ;;  %p2587_p1 = scmp.eq.s32.totalorder %s2185_s28, 0 }
  0x13   : > { %p421_p3 = scmp.eq.s32.totalorder %s1634_s29, 1  ;;  %p1635_p5 = scmp.ge.s32.totalorder %s2061_s27, 1 }
  0x14   : > { %p2194_p4 = por %p2587_p1, %p77_p0  ;;  %p428_p7 = scmp.lt.s32.totalorder %s2061_s27, 3 }
  0x15   : > { %p2199_p6 = por %p421_p3, %p77_p0  ;;  %s2063_s18 = smov [#allocation9]  }
  0x16   : > { %s2606_s30 = scalar_select %p2194_p4, 1, 0 }
  0x17   : > { %s2607_s0 = scalar_select %p2199_p6, 1, 0 }
  0x18   : > { %p2204_p8 = pnand %p1635_p5, %p428_p7  ;;  %s450_s19 = sshll.u32 %s2063_s18, 4  ;;  %s451_s19 = int_to_ptr.vmem [resolvable:$true] %s450_s19 }
  0x19   : > { %2608 = sst [smem:[#allocation17_spill]] %s2607_s0  ;;  %s2212_s20 = sadd.s32 1, %s2061_s27  }
  0x1a   : > { %s2609_s17 = scalar_select %p2204_p8, 1, 0 }
  0x1b   : > { %p1818_p10 = pneg %p2204_p8  ;;  %2610 = sst [smem:[#allocation18_spill]] %s2212_s20 }
  0x1c   : > { %s61_s22 = ssub.s32 %s2061_s27, %s2212_s20  ;;  %s64_s29 = sadd.s32 1, %s2057_s26 }
  0x1d   : > { %p2216_p11 = pnand %p1818_p10, %p2587_p1  ;;  %p2222_p12 = scmp.eq.s32.totalorder %s61_s22, 0 }
  0x1e   : > { %s2613_s8 = sld [smem:[#allocation22_spill]] }
  0x1f   : > { %s2612_s23 = scalar_select %p2222_p12, 1, 0 }
  0x20   : > { %p1901_p3 = pneg %p2216_p11 }
  0x24   : > { %s1899_s24 = scalar_lea.hbm %s2613_s8, 16 }
  0x25   : > { %p1900_p0 = scmp.ne.s32.totalorder %s2613_s8, %s1899_s24  ;;  %p1906_p10 = scmp.lt.u32.totalorder %s1899_s24, %s2613_s8 }
  0x27   : > { %p1902_p5 = pnand %p1901_p3, %p1900_p0 }
  0x29   : > { %p1903_p7 = pneg %p1902_p5 }
  0x2b   : > { %p1908_p9 = pnand %p1906_p10, %p1903_p7 }
  0x2d   : > { %1911 = shalt.err (!%p1908_p9)
}
  0x2e   : > { %s1912_s22 = scalar_lea.vmem %s451_s19, 16  ;;  %s1919_s0 = scalar_lea.vmem %s451_s19, 32 }
  0x2f   : > { %p1913_p1 = scmp.ne.s32.totalorder %s451_s19, %s1912_s22  ;;  %p1920_p6 = scmp.lt.s32.totalorder %s451_s19, %s451_s19 }
  0x30   : > { %p1921_p4 = scmp.lt.s32.totalorder %s1919_s0, %s1912_s22 }
  0x31   : > { %p1915_p2 = pnand %p1913_p1, %p1901_p3 }
  0x32   : > { %p1922_p8 = por %p1921_p4, %p1920_p6 }
  0x33   : > { %p1916_p13 = pneg %p1915_p2 }
  0x35   : > { %p1923_p12 = pnand %p1922_p8, %p1916_p13 }
  0x37   : > { %1926 = shalt.err (!%p1923_p12)
}
  0x38   : > { %1821 = dma.hbm_to_vmem [thread:$0]  (!%p2216_p11), %s2613_s8, 16, %s451_s19, [#allocation8]  }
  0x39   : > { %p2614_p1 = scmp.ne.s32.totalorder %s2612_s23, 0  ;;  %p72_p2 = scmp.eq.s32.totalorder %s2061_s27, 0 }
  0x3a   : > { %p2616_p4 = scmp.ne.s32.totalorder %s2057_s26, %s2053_s25  ;;  %p2617_p6 = scmp.eq.s32.totalorder %s2185_s28, 1 }
  0x3b   : > { %s2248_s13 = scalar_select %p2614_p1, %s2057_s26, %s64_s29  }
  0x3c   : > { %p2256_p8 = por %p2617_p6, %p2616_p4  ;;  %p1834_p9 = scmp.lt.s32.totalorder %s2061_s27, 2 }
  0x3d   : > { %2615 = sst [smem:[#allocation19_spill]] %s2248_s13  ;;  %s482_s20 = sand.u32 1, %s2057_s26  }
  0x3e   : > { %s2618_s24 = scalar_select %p2256_p8, 1, 0 }
  0x3f   : > { %p2620_p12 = pmov %p2616_p4  ;;  %s2265_s21 = sshll.u32 %s482_s20, 2 }
  0x40   : > { %2619 = sst [smem:[#allocation20_spill]] %s2618_s24  ;;  %s1639_s18 = sshll.u32 %s2061_s27, 6 }
  0x41   : > { %p73_p13 = por %p72_p2, %p2620_p12  ;;  %s2271_s23 = scalar_lea.hbm %s2566_s1, %s1639_s18 }
  0x42   : > { %s486_s29 = scalar_lea.vmem [#allocation4], %s2265_s21  ;;  %s2283_s22 = scalar_lea.hbm %s2567_s2, %s1639_s18 }
  0x43   : > { %s493_s0 = sshll.u32 %s486_s29, 4  ;;  %p2274_p11 = pnand %p1834_p9, %p73_p13  ;;  %s2278_s0 = int_to_ptr.vmem [resolvable:$true] %s493_s0 }
  0x44   : > { %s483_s19 = scalar_lea.sflag [#allocation5], %s482_s20  ;;  %s1927_s13 = scalar_lea.hbm %s2271_s23, 64 }
  0x45   : > { %p1928_p0 = scmp.ne.s32.totalorder %s2271_s23, %s1927_s13  ;;  %p1929_p3 = pneg %p2274_p11 }
  0x46   : > { %s1932_s24 = scalar_lea.hbm %s2566_s1, 128  ;;  %p1933_p10 = scmp.lt.u32.totalorder %s2271_s23, %s2566_s1 }
  0x47   : > { %p1930_p5 = pnand %p1929_p3, %p1928_p0  ;;  %p1934_p1 = scmp.lt.u32.totalorder %s1932_s24, %s1927_s13 }
  0x48   : > { %p1936_p4 = scmp.lt.u32.totalorder %s1927_s13, %s2271_s23 }
  0x49   : > { %p1931_p7 = pneg %p1930_p5  ;;  %p1935_p2 = por %p1934_p1, %p1933_p10 }
  0x4b   : > { %p1937_p6 = por %p1936_p4, %p1935_p2 }
  0x4d   : > { %p1938_p9 = pnand %p1937_p6, %p1931_p7 }
  0x4f   : > { %1941 = shalt.err (!%p1938_p9)
}
  0x50   : > { %s1942_s8 = scalar_lea.vmem %s2278_s0, 64  ;;  %s2064_s26 = smov [#allocation4]  }
  0x51   : > { %p1943_p12 = scmp.ne.s32.totalorder %s2278_s0, %s1942_s8  ;;  %s1947_s20 = sshll.u32 %s2064_s26, 4  ;;  %s1948_s20 = int_to_ptr.vmem [resolvable:$false] %s1947_s20 }
  0x52   : > { %s1949_s12 = scalar_lea.vmem %s1948_s20, 128  ;;  %p1950_p5 = scmp.lt.s32.totalorder %s2278_s0, %s1948_s20 }
  0x53   : > { %p1945_p13 = pnand %p1943_p12, %p1929_p3  ;;  %p1951_p10 = scmp.lt.s32.totalorder %s1949_s12, %s1942_s8 }
  0x55   : > { %p1946_p0 = pneg %p1945_p13  ;;  %p1952_p1 = por %p1951_p10, %p1950_p5 }
  0x57   : > { %p1953_p2 = pnand %p1952_p1, %p1946_p0 }
  0x59   : > { %1956 = shalt.err (!%p1953_p2)
}
  0x5a   : > { %1825 = dma.hbm_to_vmem [thread:$0]  (!%p2274_p11), %s2271_s23, 64, %s2278_s0, %s483_s19  }
  0x5b   : > { %s500_s14 = sand.u32 1, %s2061_s27   ;;  %s504_s13 = scalar_lea.vmem [#allocation7], %s2265_s21 }
  0x5c   : > { %s511_s24 = sshll.u32 %s504_s13, 4  ;;  %s501_s18 = scalar_lea.sflag [#allocation8], %s500_s14  ;;  %s512_s24 = int_to_ptr.vmem [resolvable:$true] %s511_s24 }
  0x5d   : > { %s1957_s16 = scalar_lea.hbm %s2283_s22, 64  ;;  %s1962_s26 = scalar_lea.hbm %s2567_s2, 128 }
  0x5e   : > { %p1958_p7 = scmp.ne.s32.totalorder %s2283_s22, %s1957_s16  ;;  %p1963_p9 = scmp.lt.u32.totalorder %s2283_s22, %s2567_s2 }
  0x5f   : > { %p1964_p12 = scmp.lt.u32.totalorder %s1962_s26, %s1957_s16  ;;  %p1966_p0 = scmp.lt.u32.totalorder %s1957_s16, %s2283_s22 }
  0x60   : > { %p1960_p4 = pnand %p1958_p7, %p1929_p3 }
  0x61   : > { %p1965_p13 = por %p1964_p12, %p1963_p9 }
  0x62   : > { %p1961_p6 = pneg %p1960_p4 }
  0x63   : > { %p1967_p5 = por %p1966_p0, %p1965_p13 }
  0x65   : > { %p1968_p10 = pnand %p1967_p5, %p1961_p6 }
  0x67   : > { %1971 = shalt.err (!%p1968_p10)
}
  0x68   : > { %s1972_s21 = scalar_lea.vmem %s512_s24, 64  ;;  %s2065_s23 = smov [#allocation7]  }
  0x69   : > { %p1973_p1 = scmp.ne.s32.totalorder %s512_s24, %s1972_s21  ;;  %s1977_s0 = sshll.u32 %s2065_s23, 4  ;;  %s1978_s0 = int_to_ptr.vmem [resolvable:$false] %s1977_s0 }
  0x6a   : > { %s1979_s19 = scalar_lea.vmem %s1978_s0, 128  ;;  %p1980_p4 = scmp.lt.s32.totalorder %s512_s24, %s1978_s0 }
  0x6b   : > { %p1975_p2 = pnand %p1973_p1, %p1929_p3  ;;  %p1981_p8 = scmp.lt.s32.totalorder %s1979_s19, %s1972_s21 }
  0x6d   : > { %p1976_p7 = pneg %p1975_p2  ;;  %p1982_p9 = por %p1981_p8, %p1980_p4 }
  0x6f   : > { %p1983_p12 = pnand %p1982_p9, %p1976_p7 }
  0x71   : > { %1986 = shalt.err (!%p1983_p12)
}
  0x72   : > { %1828 = dma.hbm_to_vmem [thread:$0]  (!%p2274_p11), %s2283_s22, 64, %s512_s24, %s501_s18  }
  0x73   : > { %p2622_p6 = scmp.ne.s32.totalorder %s2609_s17, 0 }
  0x74   : > { %s2334_s14 = sand.u32 (!%p2622_p6), 1, %s2053_s25   ;;  %p2623_p3 = scmp.ne.s32.totalorder (!%p2622_p6), %s2606_s30, 0 }
  0x75   : > { %541 = sbr.rel (%p2622_p6) target bundleno = 2824 (0xb08), region = 84  ;;  %s1643_s13 = sshll.u32 (!%p2622_p6), %s2334_s14, 2 }
  0x76   : > { %s544_s16 = scalar_lea.sflag (!%p2622_p6), [#allocation5], %s2334_s14  ;;  %s547_s29 = scalar_lea.vmem (!%p2622_p6), [#allocation4], %s1643_s13 }
  0x7c   : > { %2032 = dma.done.wait (%p2623_p3), %s544_s16, 64  }
  0x7d   : > { %2034 = vsyncadd (%p2623_p3), %s544_s16, 4294967232  ;;  %s552_s15 = sand.u32 1, %s2185_s28   ;;  %s556_s17 = scalar_lea.vmem [#allocation7], %s1643_s13 }
  0x7e   : > { %s553_s22 = scalar_lea.sflag [#allocation8], %s552_s15 }
  0x7f   : > { %2036 = dma.done.wait (%p2623_p3), %s553_s22, 64  }
  0x80   : > { %2038 = vsyncadd (%p2623_p3), %s553_s22, 4294967232  ;;  %p2624_p8 = scmp.eq.s32.totalorder %s2185_s28, 0 }
  0x82   : > { %2040 = dma.done.wait (%p2624_p8), [#allocation8], 16   ;;  %p2625_p11 = pmov %p2624_p8 }
  0x83   : > { %s2351_s24 = sld [smem:[#allocation3]]  ;;  %v2066_v0 = vmov 0.0   ;;  %vm2067_vm0 = vmmov 0   ;;  %vm645_vm1 = vcmask 1043456   ;;  %v639_v1 = vld [vmem:[%s556_s17] sm:$0xf] }
  0x84   : > { %2042 = vsyncadd (%p2625_p11), [#allocation8], 4294967280  ;;  %1720 = vmatprep.subr.bf16.mxu0 %v2066_v0  ;;  %1722 = vmatprep.mubr.msk.bf16.mxu0 %vm2067_vm0, %v2066_v0  ;;  %v2360_v2 = vld [vmem:[%s547_s29] sm:$0xf]  ;;  %v647_v3 = vsel %vm645_vm1, %v639_v1, 0  ;;  %vm641_vm2 = vcmask 64512  }
  0x85   : > { %1726 = vmatprep.subr.bf16.mxu1 %v2066_v0  ;;  %1728 = vmatprep.mubr.msk.bf16.mxu1 %vm2067_vm0, %v2066_v0  ;;  %v691_v4 = vld [vmem:[%s2572_s7] sm:$0xf]  ;;  %v1881_v18 = vld [vmem:[%s2575_s10 + $0x8] sm:$0xff]   ;;  %p625_p0 = scmp.lt.s32.totalorder %s2185_s28, 1  ;;  %v2068_v19 = vmov 0   ;;  %vm792_vm3 = vcmask 261120  }
  0x86   : > { %1721 = vmatpush3.bf16.msra.mxu0 %v647_v3  ;;  %v695_v5 = vsel %vm645_vm1, %v691_v4, 0  ;;  %v690_v6 = vld [vmem:[%s2571_s6] sm:$0xf]  ;;  %1879 = vset.pattern.permute.xlu0 %v2068_v19  ;;  %v1652_v22 = vld [vmem:[#allocation9] ss:$0 sm:$0xff]  ;;  %v1883_v33 = vld [vmem:[%s2574_s9 + $0x8] sm:$0xff]  }
  0x87   : > { %1727 = vmatpush3.bf16.msra.mxu1 %v695_v5  ;;  %1732 = vmatprep.subr.bf16.mxu0 %v2066_v0  ;;  %v741_v7 = vsel %vm645_vm1, %v690_v6, 0  ;;  %v1880_v17 = vld [vmem:[%s2575_s10] sm:$0xff]   ;;  %s626_s0 = scalar_select %p625_p0, %s2185_s28, 1 }
  0x88   : > { %1738 = vmatprep.subr.bf16.mxu1 %v2066_v0  ;;  %v1882_v32 = vld [vmem:[%s2574_s9] sm:$0xff]   ;;  %s624_s13 = scalar_lea.vmem [#allocation10], %s2334_s14 }
  0x89   : > { %p972_p13 = scmp.ne.f32.partialorder %s2351_s24, 1.0  ;;  %1723 = vmatmul.mubr.msk.bf16.vlgmr.msra.gmra.mrb[0].mxu0 %vm641_vm2, %v2360_v2  ;;  %s2394_s19 = sshll.u32 %s626_s0, 3  ;;  %v1660_v46 = vld [vmem:[%s2576_s11] ss:$0 sm:$0xff] }
  0x8a   : > { %1729 = vmatmul.mubr.msk.bf16.vlgmr.msra.gmra.mrb[0].mxu1 %vm641_vm2, %v639_v1  ;;  %1734 = vmatprep.mubr.msk.bf16.mxu0 %vm2067_vm0, %v2066_v0  ;;  %s628_s29 = scalar_lea.vmem %s2568_s3, %s2394_s19  ;;  %s632_s17 = scalar_lea.vmem %s2569_s4, %s2394_s19  ;;  %v2069_v54 = vmov (%p972_p13), 0   ;;  %v2070_v55 = vmov (%p972_p13), 0.0   ;;  %vm2071_vm4 = vmmov (%p972_p13), 0   ;;  %v978_v57 = vlaneseq (%p972_p13) }
  0x8b   : > { %1740 = vmatprep.mubr.msk.bf16.mxu1 %vm2067_vm0, %v2066_v0  ;;  %1733 = vmatpush3.bf16.msra.mxu0 %v741_v7  ;;  %s2408_s8 = scalar_lea.vmem %s2570_s5, %s2394_s19  ;;  %v640_v20 = vld [vmem:[%s628_s29] sm:$0xff]  ;;  %s976_s24 = sld [smem:[#allocation3]] (%p972_p13) }
  0x8c   : > { %1744 = vmatprep.subr.bf16.mxu0 %v2066_v0  ;;  %841 = vperm.xlu0 %1879, %v640_v20   ;;  %v977_v53 = vld [vmem:[%s2408_s8] sm:$0xff] (%p972_p13)  ;;  %v979_v58 = vand.u32 (%p972_p13), 127, %v978_v57 }
  0x90   : > { %1884 = vset.pattern.permute.xlu0 (%p972_p13), %v2069_v54 }
  0x91   : > { %981 = vperm.xlu0 (%p972_p13), %1884, %v977_v53   ;;  %s988_s16 = ssub.f32 (%p972_p13), 1.0, %s976_s24  ;;  %v986_v61 = vstv (%p972_p13), %s976_s24 }
  0x93   : > { %v1062_v62 = vstv (%p972_p13), %s988_s16 }
 0x10b   : > { %v2425_v37 = vpop.permute.xlu0 %841 }
 0x110   : > { %v982_v59 = vpop.permute.xlu0 (%p972_p13), %981 }
 0x111   : > { %vm983_vm5 = vcmp.eq.s32.totalorder (%p972_p13), %v982_v59, %v979_v58 }
 0x112   : > { %v984_v60 = vsel (%p972_p13), %vm983_vm5, 1.0, %v2070_v55 }
 0x15c   : > { %v683_v8 = vpop.f32.mrb[0].mxu0 }
 0x15d   : > { %v689_v9 = vpack.c.bf16 %v683_v8, %v683_v8  ;;  %v1724_v10 = vpop.f32.mrb[1].mxu0  ;;  %v731_v11 = vpop.f32.mrb[0].mxu1 }
 0x15e   : > { %v686_v12 = vpop.f32.mrb[2].mxu0  ;;  %v1730_v13 = vpop.f32.mrb[1].mxu1 }
 0x15f   : > { %v1725_v14 = vpop.f32.mrb[3].mxu0  ;;  %1735 = vmatmul.mubr.msk.bf16.vlgmr.msra.gmra.mrb[4].mxu0 %vm641_vm2, %v689_v9  ;;  %v734_v15 = vpop.f32.mrb[2].mxu1 }
 0x160   : > { %v1731_v16 = vpop.f32.mrb[3].mxu1  ;;  %1748 = vmatprep.mubr.msk.bf16.mxu0 %vm2067_vm0, %v2066_v0  ;;  %1745 = vmatpush3.bf16.msra.mxu0 %v1880_v17 }
 0x161   : > { %1746 = vmatprep.subr.bf16.mxu0 %v2066_v0 }
 0x164   : > { %1747 = vmatpush3.bf16.msra.mxu0 %v1881_v18 }
 0x165   : > { %1760 = vmatprep.subr.mxu0 (%p972_p13), %v2070_v55 }
 0x232   : > { %v777_v21 = vpop.f32.mrb[4].mxu0 }
 0x233   : > { %v778_v23 = vadd.f32 %v777_v21, %v731_v11  ;;  %v1736_v24 = vpop.f32.mrb[5].mxu0 }
 0x234   : > { %v780_v25 = vpop.f32.mrb[6].mxu0 }
 0x235   : > { %v790_v26 = vadd.f32 %v1652_v22, %v778_v23  ;;  %v1737_v27 = vpop.f32.mrb[7].mxu0 }
 0x237   : > { %v791_v28 = vmax.f32 %v790_v26, 0.0 }
 0x239   : > { %793 = vst.msk [vmem:[#allocation2] sm:$0xff] %vm792_vm3, %v791_v28 }
 0x240   : > { %v794_v29 = vld [vmem:[#allocation2] sm:$0xff] }
 0x241   : > { %v795_v30 = vpack.c.bf16 %v794_v29, %v794_v29 }
 0x243   : > { %1749 = vmatmul.mubr.msk.bf16.vlgmr.msra.gmra.mrb[8].mxu0 %vm792_vm3, %v795_v30  ;;  %v797_v31 = vsel %vm645_vm1, %v795_v30, 0 }
 0x244   : > { %1739 = vmatpush3.bf16.msra.mxu1 %v797_v31  ;;  %1762 = vmatprep.mubr.msk.f32.mxu0 (%p972_p13), %vm2071_vm4, %v2070_v55 }
 0x245   : > { %1752 = vmatprep.subr.bf16.mxu1 %v2066_v0 }
 0x247   : > { %1741 = vmatmul.mubr.msk.bf16.vlgmr.msra.gmra.mrb[4].mxu1 %vm641_vm2, %v2360_v2 }
 0x248   : > { %1756 = vmatprep.mubr.msk.bf16.mxu1 %vm2067_vm0, %v2066_v0  ;;  %1753 = vmatpush3.bf16.msra.mxu1 %v1882_v32 }
 0x249   : > { %1754 = vmatprep.subr.bf16.mxu1 %v2066_v0 }
 0x24c   : > { %1755 = vmatpush3.bf16.msra.mxu1 %v1883_v33 }
 0x316   : > { %v902_v34 = vpop.f32.mrb[8].mxu0 }
 0x317   : > { %v1750_v35 = vpop.f32.mrb[9].mxu0 }
 0x318   : > { %v905_v36 = vpop.f32.mrb[10].mxu0 }
 0x319   : > { %v1751_v38 = vpop.f32.mrb[11].mxu0 }
 0x31a   : > { %v833_v39 = vpop.f32.mrb[4].mxu1 }
 0x31b   : > { %v844_v40 = vmul.f32 %v2425_v37, %v833_v39  ;;  %v1742_v41 = vpop.f32.mrb[5].mxu1 }
 0x31c   : > { %v836_v42 = vpop.f32.mrb[6].mxu1 }
 0x31d   : > { %v845_v43 = vpack.c.bf16 %v844_v40, %v844_v40  ;;  %v1743_v44 = vpop.f32.mrb[7].mxu1 }
 0x31f   : > { %1757 = vmatmul.mubr.msk.bf16.vlgmr.msra.gmra.mrb[8].mxu1 %vm792_vm3, %v845_v43 }
 0x3f2   : > { %v957_v45 = vpop.f32.mrb[8].mxu1 }
 0x3f3   : > { %v958_v47 = vadd.f32 %v957_v45, %v902_v34  ;;  %v1758_v48 = vpop.f32.mrb[9].mxu1  ;;  %975 = sbr.rel (!%p972_p13) target bundleno = 1243 (0x4db), region = 100 }
 0x3f4   : > { %v960_v49 = vpop.f32.mrb[10].mxu1 }
 0x3f5   : > { %v968_v50 = vadd.f32 %v1660_v46, %v958_v47  ;;  %v1759_v51 = vpop.f32.mrb[11].mxu1 }
 0x3f7   : > { %v969_v52 = vmax.f32 %v968_v50, 0.0 }
 0x3f9   : > { %970 = vst.msk [vmem:[#allocation2] sm:$0xff] %vm792_vm3, %v969_v52 }
 0x400   : > { %v985_v56 = vld [vmem:[#allocation2] sm:$0xff] }
 0x401   : > { %1761 = vmatpush3.msra.mxu0 %v985_v56  ;;  %v987_v63 = vmul.f32 %v986_v61, %v985_v56 }
 0x402   : > { %1763 = vmatmul.mubr.msk.f32.vlgmr.msra.gmra.mrb[0].mxu0 %vm641_vm2, %v984_v60 }
 0x4d5   : > { %v1058_v1 = vpop.f32.mrb[0].mxu0 }
 0x4d6   : > { %v1063_v3 = vmul.f32 %v1062_v62, %v1058_v1  ;;  %v1764_v4 = vpop.f32.mrb[1].mxu0 }
 0x4d8   : > { %v1064_v5 = vadd.f32 %v1063_v3, %v987_v63 }
 0x4da   : > { %1065 = vst.msk [vmem:[#allocation2] sm:$0xff] %vm792_vm3, %v1064_v5 }
 0x4db PF: > { %1765 = vmatprep.subr.bf16.mxu0 %v2066_v0  ;;  %1767 = vmatprep.mubr.msk.bf16.mxu0 %vm2067_vm0, %v2066_v0  ;;  %v1885_v8 = vld [vmem:[%s2575_s10 + $0x10] sm:$0xff]   ;;  %v1887_v10 = vld [vmem:[%s2575_s10 + $0x18] sm:$0xff]   ;;  %s1240_s21 = sld [smem:[#allocation3]]  ;;  %v1677_v24 = vld [vmem:[%s2576_s11 + $0x1] ss:$0 sm:$0xff] }
 0x4dc   : > { %1771 = vmatprep.subr.bf16.mxu1 %v2066_v0  ;;  %1775 = vmatprep.mubr.msk.bf16.mxu1 %vm2067_vm0, %v2066_v0  ;;  %v1886_v11 = vld [vmem:[%s2574_s9 + $0x10] sm:$0xff]   ;;  %v1888_v12 = vld [vmem:[%s2574_s9 + $0x18] sm:$0xff]  }
 0x4dd   : > { %1772 = vmatpush3.bf16.msra.mxu1 %v1885_v8 }
 0x4de   : > { %1773 = vmatprep.subr.bf16.mxu1 %v2066_v0 }
 0x4e1   : > { %v1066_v6 = vld [vmem:[#allocation2] sm:$0xff]  ;;  %1774 = vmatpush3.bf16.msra.mxu1 %v1887_v10  ;;  %p1241_p5 = scmp.ne.f32.partialorder %s1240_s21, 1.0 }
 0x4e2   : > { %v1067_v7 = vpack.c.bf16 %v1066_v6, %v1066_v6  ;;  %v1246_v31 = vld [vmem:[%s2408_s8] sm:$0xff] (%p1241_p5)  ;;  %v2072_v32 = vmov (%p1241_p5), 1   ;;  %v2073_v33 = vmov (%p1241_p5), 0.0   ;;  %vm2074_vm6 = vmmov (%p1241_p5), 0   ;;  %s1245_s24 = sld [smem:[#allocation3]] (%p1241_p5) }
 0x4e3   : > { %1889 = vset.pattern.permute.xlu0 (%p1241_p5), %v2072_v32  ;;  %v1247_v35 = vlaneseq (%p1241_p5) }
 0x4e4   : > { %v1069_v9 = vsel %vm645_vm1, %v1067_v7, 0  ;;  %1776 = vmatmul.mubr.msk.bf16.vlgmr.msra.gmra.mrb[0].mxu1 %vm792_vm3, %v1067_v7  ;;  %1250 = vperm.xlu0 (%p1241_p5), %1889, %v1246_v31  }
 0x4e5   : > { %1766 = vmatpush3.bf16.msra.mxu0 %v1069_v9  ;;  %v1248_v36 = vand.u32 (%p1241_p5), 127, %v1247_v35 }
 0x4e6   : > { %1779 = vmatprep.subr.bf16.mxu0 %v2066_v0 }
 0x4e8   : > { %1768 = vmatmul.mubr.msk.bf16.vlgmr.msra.gmra.mrb[0].mxu0 %vm641_vm2, %v2360_v2  ;;  %s1257_s16 = ssub.f32 (%p1241_p5), 1.0, %s1245_s24  ;;  %v1255_v39 = vstv (%p1241_p5), %s1245_s24 }
 0x4e9   : > { %1780 = vmatpush3.bf16.msra.mxu0 %v1886_v11  ;;  %1783 = vmatprep.mubr.msk.bf16.mxu0 %vm2067_vm0, %v2066_v0 }
 0x4ea   : > { %1781 = vmatprep.subr.bf16.mxu0 %v2066_v0  ;;  %v1331_v40 = vstv (%p1241_p5), %s1257_s16 }
 0x4ed   : > { %1782 = vmatpush3.bf16.msra.mxu0 %v1888_v12 }
 0x4ee   : > { %1787 = vmatprep.subr.mxu0 (%p1241_p5), %v2073_v33 }
 0x5b7   : > { %v1171_v18 = vpop.f32.mrb[0].mxu1 }
 0x5b8   : > { %v1777_v20 = vpop.f32.mrb[1].mxu1 }
 0x5b9   : > { %v1174_v21 = vpop.f32.mrb[2].mxu1 }
 0x5ba   : > { %v1778_v22 = vpop.f32.mrb[3].mxu1 }
 0x5bb   : > { %v1105_v13 = vpop.f32.mrb[0].mxu0 }
 0x5bc   : > { %v1111_v14 = vmul.f32 %v1105_v13, %v2425_v37  ;;  %v1769_v15 = vpop.f32.mrb[1].mxu0  ;;  %v1251_v37 = vpop.permute.xlu0 (%p1241_p5), %1250 }
 0x5bd   : > { %v1108_v16 = vpop.f32.mrb[2].mxu0  ;;  %vm1252_vm7 = vcmp.eq.s32.totalorder (%p1241_p5), %v1251_v37, %v1248_v36 }
 0x5be   : > { %v1112_v2 = vpack.c.bf16 %v1111_v14, %v1111_v14  ;;  %v1770_v17 = vpop.f32.mrb[3].mxu0  ;;  %v1253_v38 = vsel (%p1241_p5), %vm1252_vm7, 1.0, %v2073_v33 }
 0x5c0   : > { %1784 = vmatmul.mubr.msk.bf16.vlgmr.msra.gmra.mrb[4].mxu0 %vm792_vm3, %v1112_v2 }
 0x5c1   : > { %1789 = vmatprep.mubr.msk.f32.mxu0 (%p1241_p5), %vm2074_vm6, %v2073_v33 }
 0x693   : > { %v1226_v23 = vpop.f32.mrb[4].mxu0 }
 0x694   : > { %v1227_v25 = vadd.f32 %v1226_v23, %v1171_v18  ;;  %v1785_v26 = vpop.f32.mrb[5].mxu0  ;;  %1244 = sbr.rel (!%p1241_p5) target bundleno = 1916 (0x77c), region = 104 }
 0x695   : > { %v1229_v27 = vpop.f32.mrb[6].mxu0 }
 0x696   : > { %v1237_v28 = vadd.f32 %v1677_v24, %v1227_v25  ;;  %v1786_v29 = vpop.f32.mrb[7].mxu0 }
 0x698   : > { %v1238_v30 = vmax.f32 %v1237_v28, 0.0 }
 0x69a   : > { %1239 = vst.msk [vmem:[#allocation2] sm:$0xff] %vm792_vm3, %v1238_v30 }
 0x6a1   : > { %v1254_v34 = vld [vmem:[#allocation2] sm:$0xff] }
 0x6a2   : > { %1788 = vmatpush3.msra.mxu0 %v1254_v34  ;;  %v1256_v41 = vmul.f32 %v1255_v39, %v1254_v34 }
 0x6a3   : > { %1790 = vmatmul.mubr.msk.f32.vlgmr.msra.gmra.mrb[0].mxu0 %vm641_vm2, %v1253_v38 }
 0x776   : > { %v1327_v42 = vpop.f32.mrb[0].mxu0 }
 0x777   : > { %v1332_v43 = vmul.f32 %v1331_v40, %v1327_v42  ;;  %v1791_v44 = vpop.f32.mrb[1].mxu0 }
 0x779   : > { %v1333_v45 = vadd.f32 %v1332_v43, %v1256_v41 }
 0x77b   : > { %1334 = vst.msk [vmem:[#allocation2] sm:$0xff] %vm792_vm3, %v1333_v45 }
 0x77c PF: > { %1890 = vset.pattern.permute.xlu0 %v2068_v19  ;;  %v1336_v46 = vld [vmem:[%s632_s17] sm:$0xff]  ;;  %1792 = vmatprep.subr.bf16.mxu0 %v2066_v0  ;;  %s2626_s30 = sld [smem:[#allocation23_spill]]  ;;  %s2627_s20 = sld [smem:[#allocation25_spill]]  ;;  %vm1473_vm8 = vcmask 24576  }
 0x77d   : > { %1339 = vperm.xlu0 %1890, %v1336_v46   ;;  %1796 = vmatprep.mubr.msk.bf16.mxu0 %vm2067_vm0, %v2066_v0  ;;  %s2628_s24 = sld [smem:[#allocation24_spill]]  ;;  %s2629_s29 = sld [smem:[#allocation26_spill]] }
 0x77e   : > { %1800 = vmatprep.subr.bf16.mxu1 %v2066_v0  ;;  %1804 = vmatprep.mubr.msk.bf16.mxu1 %vm2067_vm0, %v2066_v0  ;;  %s2630_s15 = sld [smem:[#allocation20_spill]]  ;;  %s1685_s22 = sshll.u32 %s2185_s28, 4 }
 0x77f   : > { %s1500_s19 = sshll.u32 %s624_s13, 4  ;;  %s2631_s26 = sld [smem:[#allocation27_spill]]  ;;  %s2520_s19 = int_to_ptr.vmem [resolvable:$true] %s1500_s19 }
 0x780   : > { %s1488_s23 = scalar_lea.sflag [#allocation6], %s2334_s14  ;;  %s1987_s0 = scalar_lea.vmem %s2520_s19, 16 }
 0x781   : > { %p1988_p10 = scmp.ne.s32.totalorder %s2520_s19, %s1987_s0  ;;  %s2075_s28 = smov [#allocation10]  }
 0x782   : > { %v1891_v19 = vld [vmem:[%s2626_s30] sm:$0xff]   ;;  %v1892_v47 = vld [vmem:[%s2626_s30 + $0x8] sm:$0xff]  }
 0x783   : > { %1793 = vmatpush3.bf16.msra.mxu0 %v1891_v19  ;;  %v1335_v48 = vld [vmem:[#allocation2] sm:$0xff]  ;;  %v1894_v60 = vld [vmem:[%s2627_s20 + $0x8] sm:$0xff]  }
 0x784   : > { %1794 = vmatprep.subr.bf16.mxu0 %v2066_v0  ;;  %v1893_v59 = vld [vmem:[%s2627_s20] sm:$0xff]   ;;  %p2633_p1 = scmp.ne.s32.totalorder %s2630_s15, 0 }
 0x785   : > { %1801 = vmatpush3.bf16.msra.mxu1 %v1893_v59  ;;  %v1355_v61 = vld [vmem:[%s2628_s24] sm:$0x1]  ;;  %s2632_s12 = smov %s2631_s26  ;;  %s2518_s21 = scalar_lea.hbm %s2631_s26, %s1685_s22 }
 0x786   : > { %1802 = vmatprep.subr.bf16.mxu1 %v2066_v0  ;;  %v1417_v0 = vld [vmem:[%s2629_s29] sm:$0x1]  ;;  %p1989_p2 = pnand %p1988_p10, %p2633_p1  ;;  %s1991_s24 = sshll.u32 %s2075_s28, 4  ;;  %s1992_s24 = int_to_ptr.vmem [resolvable:$false] %s1991_s24 }
 0x787   : > { %1795 = vmatpush3.bf16.msra.mxu0 %v1892_v47  ;;  %s1993_s16 = scalar_lea.vmem %s1992_s24, 32  ;;  %p1994_p4 = scmp.lt.s32.totalorder %s2520_s19, %s1992_s24 }
 0x788   : > { %p1990_p7 = pneg %p1989_p2  ;;  %p1995_p9 = scmp.lt.s32.totalorder %s1993_s16, %s1987_s0 }
 0x789   : > { %1803 = vmatpush3.bf16.msra.mxu1 %v1894_v60 }
 0x78a   : > { %p1996_p12 = por %p1995_p9, %p1994_p4 }
 0x78c   : > { %p1997_p6 = pnand %p1996_p12, %p1990_p7 }
 0x7fc   : > { %v1340_v49 = vpop.permute.xlu0 %1339 }
 0x7fd   : > { %v1342_v50 = vmul.f32 %v1340_v49, %v1335_v48 }
 0x7ff   : > { %v1343_v51 = vsel %vm792_vm3, %v1342_v50, 0.0 }
 0x800   : > { %v1344_v52 = vrot.slane %v1343_v51, 4 }
 0x802   : > { %v1345_v53 = vadd.f32 %v1344_v52, %v1343_v51 }
 0x804   : > { %v1346_v54 = vrot.slane %v1345_v53, 2 }
 0x806   : > { %v1347_v55 = vadd.f32 %v1346_v54, %v1345_v53 }
 0x808   : > { %v1348_v56 = vrot.slane %v1347_v55, 1 }
 0x80a   : > { %v1349_v57 = vadd.f32 %v1348_v56, %v1347_v55 }
 0x80c   : > { %v1350_v58 = vpack.c.bf16 %v1349_v57, %v1349_v57 }
 0x80e   : > { %1797 = vmatmul.mubr.msk.bf16.vlgmr.msra.gmra.mrb[0].mxu0 %vm792_vm3, %v1350_v58 }
 0x8e1   : > { %v1405_v62 = vpop.f32.mrb[0].mxu0 }
 0x8e2   : > { %v1406_v63 = vadd.f32 %v1405_v62, %v1355_v61  ;;  %v1798_v1 = vpop.f32.mrb[1].mxu0 }
 0x8e3   : > { %v1408_v3 = vpop.f32.mrb[2].mxu0 }
 0x8e4   : > { %v1411_v4 = vmax.f32 %v1406_v63, 0.0  ;;  %v1799_v5 = vpop.f32.mrb[3].mxu0 }
 0x8e6   : > { %v1412_v6 = vpack.c.bf16 %v1411_v4, %v1411_v4 }
 0x8e8   : > { %1805 = vmatmul.mubr.msk.bf16.vlgmr.msra.gmra.mrb[0].mxu1 %vm792_vm3, %v1412_v6 }
 0x9bb   : > { %v1467_v7 = vpop.f32.mrb[0].mxu1 }
 0x9bc   : > { %v1468_v8 = vadd.f32 %v1467_v7, %v1417_v0  ;;  %v1806_v9 = vpop.f32.mrb[1].mxu1 }
 0x9bd   : > { %v1470_v10 = vpop.f32.mrb[2].mxu1 }
 0x9be   : > { %v1807_v11 = vpop.f32.mrb[3].mxu1  ;;  %v1474_v12 = vsel %vm1473_vm8, %v1468_v8, -inf }
 0x9bf   : > { %1475 = vmax.xlane.f32.xlu0 %v1474_v12 }
 0xa4c   : > { %v1476_v13 = vpop.xlane.xlu0 %1475 }
 0xa4d   : > { %v1477_v14 = vsub.f32 %v1468_v8, %v1476_v13 }
 0xa4f   : > { %v1478_v15 = vmul.f32 1.442695, %v1477_v14 }
 0xa51   : > { %1895 = vpow2.f32 %v1478_v15 }
 0xa5b   : > { %v1896_v16 = vpop.eup %1895 }
 0xa5c   : > { %v1480_v2 = vsel %vm1473_vm8, %v1896_v16, 0.0 }
 0xa5d   : > { %1481 = vadd.xlane.f32.xlu1 %v1480_v2 }
 0xaea   : > { %v1482_v17 = vpop.xlane.xlu1 %1481 }
 0xaeb   : > { %1897 = vlog2.f32 %v1482_v17 }
 0xaf5   : > { %v1898_v18 = vpop.eup %1897 }
 0xaf6   : > { %v1484_v20 = vmul.f32 0.6931472, %v1898_v18 }
 0xaf8   : > { %v1485_v21 = vsub.f32 %v1477_v14, %v1484_v20 }
 0xafa   : > { %1486 = vst.msk [vmem:[%s624_s13] sm:$0x1] %vm1473_vm8, %v1485_v21 }
 0xafb   : > { %2000 = shalt.err (!%p1997_p6)
}
 0xafc   : > { %s2001_s14 = scalar_lea.hbm %s2518_s21, 16  ;;  %s2005_s29 = scalar_lea.hbm %s2632_s12, 32 }
 0xafd   : > { %p2002_p3 = scmp.ne.s32.totalorder %s2518_s21, %s2001_s14  ;;  %p2006_p13 = scmp.lt.u32.totalorder %s2518_s21, %s2632_s12 }
 0xafe   : > { %p2007_p0 = scmp.lt.u32.totalorder %s2005_s29, %s2001_s14  ;;  %p2009_p10 = scmp.lt.u32.totalorder %s2001_s14, %s2518_s21 }
 0xaff   : > { %p2003_p8 = pnand %p2002_p3, %p2633_p1 }
 0xb00   : > { %p2008_p5 = por %p2007_p0, %p2006_p13 }
 0xb01   : > { %p2004_p11 = pneg %p2003_p8 }
 0xb02   : > { %p2010_p2 = por %p2009_p10, %p2008_p5 }
 0xb04   : > { %p2011_p7 = pnand %p2010_p2, %p2004_p11 }
 0xb06   : > { %2014 = shalt.err (!%p2011_p7)
}
 0xb07   : > { %1816 = dma.vmem_to_hbm [thread:$0]  (%p2633_p1), %s2520_s19, 16, %s2518_s21, %s1488_s23  }
 0xb08 PF: > { %s2634_s18 = sld [smem:[#allocation15_spill]]  ;;  %s2635_s26 = sld [smem:[#allocation17_spill]] }
 0xb09   : > { %p2637_p9 = scmp.ge.s32.totalorder %s2061_s27, 2 }
 0xb0e   : > { %s1512_s0 = sand.u32 1, %s2634_s18   ;;  %p2636_p4 = scmp.ne.s32.totalorder %s2635_s26, 0 }
 0xb0f   : > { %s1513_s28 = scalar_lea.sflag [#allocation6], %s1512_s0 }
 0xb10   : > { %p1830_p12 = pnand %p2637_p9, %p2636_p4 }
 0xb12   : > { %2044 = dma.done.wait (!%p1830_p12), %s1513_s28, 16  }
 0xb13   : > { %2046 = vsyncadd (!%p1830_p12), %s1513_s28, 4294967280  ;;  %s2638_s27 = sld [smem:[#allocation18_spill]]  ;;  %s2639_s16 = sld [smem:[#allocation16_spill]] }
 0xb14   : > { %s2640_s26 = sld [smem:[#allocation19_spill]]  ;;  %s2641_s24 = smov %s2053_s25 }
 0xb19   : > { %p33_p6 = scmp.ge.s32.totalorder %s2638_s27, 4   ;;  %s2642_s25 = smov %s2639_s16 }
 0xb1b   :  { %35 = sbr.rel (!%p33_p6) target bundleno = 16 (0x10), region = 165 }
 0xb22   :  { %1517 = vsyncpa [#allocation5], 1 }
 0xb23   :  { %1519 = vsyncpa [#allocation5 + $0x1], 1 }
 0xb24   :  { %1520 = vsyncpa [#allocation8], 1 }
 0xb25   :  { %1522 = vsyncpa [#allocation8 + $0x1], 1 }
 0xb26   :  { %1523 = vsyncpa [#allocation6], 1 }
 0xb27   :  { %1525 = vsyncpa [#allocation6 + $0x1], 1 }

</bundles_post_ra>
